<compile_context>
chip_gen: v6e
topology: v6e:2x2x1
jax: 0.10.0
libtpu: 0.0.40
codegen_flags: <defaults>
</compile_context>

<pallas_src>
import functools

import jax
import jax.numpy as jnp
from jax.experimental import pallas as pl
from jax.experimental.pallas import tpu as pltpu


def _round_up(n, m):
    return ((n + m - 1) // m) * m


def _fnn_kernel(x_ref, w1_ref, b1_ref, w2_ref, b2_ref, out_ref):
    # x_ref: (TB, Ip)   w1_ref: (Ip, Hp)  b1_ref: (1, Hp)
    # w2_ref: (Hp, Op)  b2_ref: (1, Op)   out_ref: (TB, Op)
    x = x_ref[...]

    # fc1 + tanh (MXU matmul with f32 accumulation, f32 elementwise).
    h = jnp.dot(x, w1_ref[...], preferred_element_type=jnp.float32) + b1_ref[...]
    h = jnp.tanh(h)

    # fc2. Padded output columns carry zero W2 weights and a -1e30 bias set in
    # the wrapper, so they vanish under softmax (no in-kernel mask needed).
    logits = (
        jnp.dot(h.astype(w2_ref.dtype), w2_ref[...],
                preferred_element_type=jnp.float32)
        + b2_ref[...]
    )  # (TB, Op), f32

    # Numerically stable softmax over dim=1 (feature axis).
    m = jnp.max(logits, axis=1, keepdims=True)
    e = jnp.exp(logits - m)
    denom = jnp.sum(e, axis=1, keepdims=True)
    out_ref[...] = (e * pl.reciprocal(denom, approx=True)).astype(out_ref.dtype)


@functools.partial(jax.jit,
                   static_argnames=("block_b", "use_bf16_mxu", "out_dtype"))
def fnn_forward(x, w1, b1, w2, b2, *, block_b=512, use_bf16_mxu=True,
                out_dtype=jnp.float32):
    """Fused FNN forward. x: (B, I); w1: (I, H); b1: (1, H); w2: (H, O); b2: (1, O)."""
    B, I = x.shape
    H = w1.shape[1]
    O = w2.shape[1]

    # bf16 MXU inputs by default (f32 accumulation via preferred_element_type).
    mxu_dtype = jnp.bfloat16 if use_bf16_mxu else jnp.float32
    sublane = 16 if use_bf16_mxu else 8

    # Lane-align feature dims (128). Batch block: requested size, rounded to a
    # sublane multiple, clamped down for small batches so we don't pad 8 rows
    # out to 512.
    Ip = _round_up(I, 128)
    Hp = _round_up(H, 128)
    Op = _round_up(O, 128)
    block = min(_round_up(block_b, sublane), _round_up(B, sublane))
    Bp = _round_up(B, block)

    # --- Inputs -------------------------------------------------------------
    # Skip the extra zero-pad HBM pass over x when shapes are already aligned.
    if Ip == I and Bp == B:
        xp = x.astype(mxu_dtype)
    else:
        # Zero-padding is semantics-preserving: padded input columns meet zero
        # W1 rows; padded batch rows produce valid (discarded) softmax rows.
        xp = jnp.zeros((Bp, Ip), mxu_dtype).at[:B, :I].set(x.astype(mxu_dtype))

    # Weights/biases are tiny; the one-time pad cost is negligible.
    w1p = jnp.zeros((Ip, Hp), mxu_dtype).at[:I, :H].set(w1.astype(mxu_dtype))
    b1p = jnp.zeros((1, Hp), jnp.float32).at[:, :H].set(b1.astype(jnp.float32))
    # Padded W2 columns are exactly zero (required invariant) and padded b2
    # columns are -1e30, so padded logits == -1e30 -> exp() == 0 under softmax.
    w2p = jnp.zeros((Hp, Op), mxu_dtype).at[:H, :O].set(w2.astype(mxu_dtype))
    b2p = jnp.full((1, Op), -1e30, jnp.float32).at[:, :O].set(
        b2.astype(jnp.float32))

    # --- VMEM budget ----------------------------------------------------------
    in_bytes = 2 if use_bf16_mxu else 4
    out_bytes = jnp.dtype(out_dtype).itemsize
    x_tile = block * Ip * in_bytes
    o_tile = block * Op * out_bytes
    weights = (Ip * Hp + Hp * Op) * in_bytes + (Hp + Op) * 4
    # Pallas double-buffers every operand; add headroom for compiler scratch.
    needed = 2 * (x_tile + o_tile + weights)
    vmem_limit = int(min(max(needed + (16 << 20), 32 << 20), 120 << 20))

    grid = (Bp // block,)

    out_padded = pl.pallas_call(
        _fnn_kernel,
        out_shape=jax.ShapeDtypeStruct((Bp, Op), out_dtype),
        grid=grid,
        in_specs=[
            # Activations: one batch tile per grid step (pipelined).
            pl.BlockSpec((block, Ip), lambda i: (i, 0)),
            # Weights / biases: constant index_map -> VMEM-resident across steps.
            pl.BlockSpec((Ip, Hp), lambda i: (0, 0)),
            pl.BlockSpec((1, Hp), lambda i: (0, 0)),
            pl.BlockSpec((Hp, Op), lambda i: (0, 0)),
            pl.BlockSpec((1, Op), lambda i: (0, 0)),
        ],
        # Lane-dense output tile (last dim = Op, a multiple of 128 -> unmasked vst).
        out_specs=pl.BlockSpec((block, Op), lambda i: (i, 0)),
        compiler_params=pltpu.CompilerParams(
            dimension_semantics=("parallel",),
            vmem_limit_bytes=vmem_limit,
        ),
    )(xp, w1p, b1p, w2p, b2p)

    if Bp == B and Op == O:
        return out_padded
    return out_padded[:B, :O]


def init_params(key, input_size, hidden_size, output_size):
    # Deterministic PyTorch-style uniform(-1/sqrt(fan_in), 1/sqrt(fan_in)) init.
    k1, k2, k3, k4 = jax.random.split(key, 4)
    lim1 = 1.0 / (input_size ** 0.5)
    lim2 = 1.0 / (hidden_size ** 0.5)
    w1 = jax.random.uniform(k1, (input_size, hidden_size), jnp.float32, -lim1, lim1)
    b1 = jax.random.uniform(k2, (1, hidden_size), jnp.float32, -lim1, lim1)
    w2 = jax.random.uniform(k3, (hidden_size, output_size), jnp.float32, -lim2, lim2)
    b2 = jax.random.uniform(k4, (1, output_size), jnp.float32, -lim2, lim2)
    return w1, b1, w2, b2


if __name__ == "__main__":
    key = jax.random.PRNGKey(0)
    batch, input_size, hidden_size, output_size = 8, 32, 32, 16

    kx, kp = jax.random.split(key)
    x = jax.random.normal(kx, (batch, input_size), jnp.float32)
    w1, b1, w2, b2 = init_params(kp, input_size, hidden_size, output_size)

    # Defaults: bf16 MXU inputs (f32 accumulation), large batch tiles (clamped
    # down here since batch=8), f32 output.
    out = fnn_forward(x, w1, b1, w2, b2)
    out = jax.block_until_ready(out)

    # Reference check in plain JAX (same math as the PyTorch forward).
    ref = jax.nn.softmax(jnp.tanh(x @ w1 + b1) @ w2 + b2, axis=1)
    assert out.shape == (batch, output_size)
    # bf16 MXU inputs + approx reciprocal -> ~1e-2-level agreement vs f32 ref.
    assert jnp.allclose(out, ref, atol=3e-2, rtol=3e-2)
    assert jnp.allclose(jnp.sum(out, axis=1), 1.0, atol=5e-3)

    print("KERNEL_OK")
</pallas_src>

<mosaic_0001>
module attributes {stable_mosaic.version = 11 : i64} {
  func.func @_fnn_kernel(%arg0: i32, %arg1: memref<16x128xbf16, #tpu.memory_space<vmem>>, %arg2: memref<128x128xbf16, #tpu.memory_space<vmem>>, %arg3: memref<1x128xf32, #tpu.memory_space<vmem>>, %arg4: memref<128x128xbf16, #tpu.memory_space<vmem>>, %arg5: memref<1x128xf32, #tpu.memory_space<vmem>>, %arg6: memref<16x128xf32, #tpu.memory_space<vmem>>) attributes {dimension_semantics = [#tpu.dimension_semantics<parallel>], iteration_bounds = array<i64: 1>, scalar_prefetch = 0 : i64, scratch_operands = 0 : i64, tpu.core_type = #tpu.core_type<tc>, window_params = [{transform_indices = @transform_0, window_bounds = array<i64: 16, 128>}, {pipeline_mode = #tpu.pipeline_mode<synchronous>, transform_indices = @transform_1, window_bounds = array<i64: 128, 128>}, {pipeline_mode = #tpu.pipeline_mode<synchronous>, transform_indices = @transform_2, window_bounds = array<i64: 1, 128>}, {pipeline_mode = #tpu.pipeline_mode<synchronous>, transform_indices = @transform_3, window_bounds = array<i64: 128, 128>}, {pipeline_mode = #tpu.pipeline_mode<synchronous>, transform_indices = @transform_4, window_bounds = array<i64: 1, 128>}, {transform_indices = @transform_5, window_bounds = array<i64: 16, 128>}]} {
    %c0 = arith.constant 0 : index
    %c0_0 = arith.constant 0 : index
    %0 = vector.load %arg1[%c0, %c0_0] : memref<16x128xbf16, #tpu.memory_space<vmem>>, vector<16x128xbf16>
    %c0_1 = arith.constant 0 : index
    %c0_2 = arith.constant 0 : index
    %1 = vector.load %arg2[%c0_1, %c0_2] : memref<128x128xbf16, #tpu.memory_space<vmem>>, vector<128x128xbf16>
    %cst = arith.constant dense<0.000000e+00> : vector<16x128xf32>
    %2 = tpu.matmul %0, %1, %cst {dimension_numbers = #tpu.dot_dimension_numbers<[1], [0], [0], [1], [0, 0, 1, 1], [], []>} : vector<16x128xbf16>, vector<128x128xbf16>, vector<16x128xf32> -> vector<16x128xf32>
    %c0_3 = arith.constant 0 : index
    %c0_4 = arith.constant 0 : index
    %3 = vector.load %arg3[%c0_3, %c0_4] : memref<1x128xf32, #tpu.memory_space<vmem>>, vector<1x128xf32>
    %4 = vector.broadcast %3 : vector<1x128xf32> to vector<16x128xf32>
    %5 = arith.addf %2, %4 : vector<16x128xf32>
    %6 = math.tanh %5 : vector<16x128xf32>
    %7 = arith.truncf %6 : vector<16x128xf32> to vector<16x128xbf16>
    %c0_5 = arith.constant 0 : index
    %c0_6 = arith.constant 0 : index
    %8 = vector.load %arg4[%c0_5, %c0_6] : memref<128x128xbf16, #tpu.memory_space<vmem>>, vector<128x128xbf16>
    %cst_7 = arith.constant dense<0.000000e+00> : vector<16x128xf32>
    %9 = tpu.matmul %7, %8, %cst_7 {dimension_numbers = #tpu.dot_dimension_numbers<[1], [0], [0], [1], [0, 0, 1, 1], [], []>} : vector<16x128xbf16>, vector<128x128xbf16>, vector<16x128xf32> -> vector<16x128xf32>
    %c0_8 = arith.constant 0 : index
    %c0_9 = arith.constant 0 : index
    %10 = vector.load %arg5[%c0_8, %c0_9] : memref<1x128xf32, #tpu.memory_space<vmem>>, vector<1x128xf32>
    %11 = vector.broadcast %10 : vector<1x128xf32> to vector<16x128xf32>
    %12 = arith.addf %9, %11 : vector<16x128xf32>
    %cst_10 = arith.constant dense<0xFF800000> : vector<16xf32>
    %13 = vector.multi_reduction <maximumf>, %12, %cst_10 [1] : vector<16x128xf32> to vector<16xf32>
    %14 = vector.shape_cast %13 : vector<16xf32> to vector<16x1xf32>
    %15 = vector.broadcast %14 : vector<16x1xf32> to vector<16x128xf32>
    %16 = arith.subf %12, %15 : vector<16x128xf32>
    %17 = math.exp %16 : vector<16x128xf32>
    %cst_11 = arith.constant dense<0.000000e+00> : vector<16xf32>
    %18 = vector.multi_reduction <add>, %17, %cst_11 [1] : vector<16x128xf32> to vector<16xf32>
    %19 = vector.shape_cast %18 : vector<16xf32> to vector<16x1xf32>
    %20 = tpu.reciprocal %19 {approx = true} : vector<16x1xf32> -> vector<16x1xf32>
    %21 = vector.broadcast %20 : vector<16x1xf32> to vector<16x128xf32>
    %22 = arith.mulf %17, %21 : vector<16x128xf32>
    %c0_12 = arith.constant 0 : index
    %c0_13 = arith.constant 0 : index
    %23 = vector.load %arg6[%c0_12, %c0_13] : memref<16x128xf32, #tpu.memory_space<vmem>>, vector<16x128xf32>
    tpu.vector_store %arg6[%c0_12, %c0_13], %22 {strides = array<i32>} : memref<16x128xf32, #tpu.memory_space<vmem>>, vector<16x128xf32>,
    return
  }
  func.func @transform_0(%arg0: i32) -> (i32, i32) {
    %c0_i32 = arith.constant 0 : i32
    %c0_i32_0 = arith.constant 0 : i32
    return %arg0, %c0_i32 : i32, i32
  }
  func.func @transform_1(%arg0: i32) -> (i32, i32) {
    %c0_i32 = arith.constant 0 : i32
    %c0_i32_0 = arith.constant 0 : i32
    %c0_i32_1 = arith.constant 0 : i32
    return %c0_i32, %c0_i32_0 : i32, i32
  }
  func.func @transform_2(%arg0: i32) -> (i32, i32) {
    %c0_i32 = arith.constant 0 : i32
    %c0_i32_0 = arith.constant 0 : i32
    %c0_i32_1 = arith.constant 0 : i32
    return %c0_i32, %c0_i32_0 : i32, i32
  }
  func.func @transform_3(%arg0: i32) -> (i32, i32) {
    %c0_i32 = arith.constant 0 : i32
    %c0_i32_0 = arith.constant 0 : i32
    %c0_i32_1 = arith.constant 0 : i32
    return %c0_i32, %c0_i32_0 : i32, i32
  }
  func.func @transform_4(%arg0: i32) -> (i32, i32) {
    %c0_i32 = arith.constant 0 : i32
    %c0_i32_0 = arith.constant 0 : i32
    %c0_i32_1 = arith.constant 0 : i32
    return %c0_i32, %c0_i32_0 : i32, i32
  }
  func.func @transform_5(%arg0: i32) -> (i32, i32) {
    %c0_i32 = arith.constant 0 : i32
    %c0_i32_0 = arith.constant 0 : i32
    return %arg0, %c0_i32 : i32, i32
  }
}

</mosaic_0001>

<bundles_post_ra>
// kernel: fnn_forward.1
= control target key start
LH: loop header
LB: loop body
LE: loop exit
PB: predicated region body
PF: predicated region fallthrough
CT: control target
= control target key end

     0   :  { %v388_v0 = vmov 0.0   ;;  %vm389_vm0 = vmmov 0   ;;  %s483_s1 = inlined_call_operand.vmem [shape: bf16[128,128], index: 1, kind: input, shape index: {}]   ;;  %s484_s3 = inlined_call_operand.vmem [shape: bf16[128,128], index: 3, kind: input, shape index: {}]   ;;  %s485_s0 = inlined_call_operand.vmem [shape: bf16[16,128], index: 0, kind: input, shape index: {}]   ;;  %s486_s2 = inlined_call_operand.vmem [shape: f32[1,128], index: 2, kind: input, shape index: {}]   ;;  %s487_s4 = inlined_call_operand.vmem [shape: f32[1,128], index: 4, kind: input, shape index: {}]   ;;  %s488_s5 = inlined_call_operand.vmem [shape: f32[16,128], index: 5, kind: output, shape index: {}]  }
   0x1   :  { %317 = vmatprep.subr.bf16.mxu0 %v388_v0  ;;  %v359_v1 = vld [vmem:[%s483_s1 + $0x38] sm:$0xff]   ;;  %333 = vmatprep.mubr.msk.bf16.mxu0 %vm389_vm0, %v388_v0  ;;  %v360_v2 = vld [vmem:[%s483_s1 + $0x30] sm:$0xff]   ;;  %v361_v3 = vld [vmem:[%s483_s1 + $0x28] sm:$0xff]  }
   0x2   :  { %337 = vmatprep.subr.bf16.mxu1 %v388_v0  ;;  %353 = vmatprep.mubr.msk.bf16.mxu1 %vm389_vm0, %v388_v0  ;;  %v368_v4 = vld [vmem:[%s484_s3 + $0x38] sm:$0xff]   ;;  %v362_v5 = vld [vmem:[%s483_s1 + $0x20] sm:$0xff]   ;;  %v369_v6 = vld [vmem:[%s484_s3 + $0x30] sm:$0xff]  }
   0x3   :  { %318 = vmatpush3.bf16.msra.mxu0 %v359_v1  ;;  %338 = vmatpush3.bf16.msra.mxu1 %v368_v4  ;;  %v363_v7 = vld [vmem:[%s483_s1 + $0x18] sm:$0xff]   ;;  %v364_v8 = vld [vmem:[%s483_s1 + $0x10] sm:$0xff]   ;;  %v365_v9 = vld [vmem:[%s483_s1 + $0x8] sm:$0xff]  }
   0x4   :  { %319 = vmatprep.subr.bf16.mxu0 %v388_v0  ;;  %339 = vmatprep.subr.bf16.mxu1 %v388_v0  ;;  %v366_v10 = vld [vmem:[%s483_s1] sm:$0xff]   ;;  %v370_v12 = vld [vmem:[%s484_s3 + $0x28] sm:$0xff]   ;;  %v372_v14 = vld [vmem:[%s484_s3 + $0x18] sm:$0xff]  }
   0x5   :  { %v367_v11 = vld [vmem:[%s485_s0] sm:$0xff]   ;;  %v373_v15 = vld [vmem:[%s484_s3 + $0x10] sm:$0xff]   ;;  %v374_v16 = vld [vmem:[%s484_s3 + $0x8] sm:$0xff]  }
   0x6   :  { %v371_v13 = vld [vmem:[%s484_s3 + $0x20] sm:$0xff]  }
   0x7   :  { %320 = vmatpush3.bf16.msra.mxu0 %v360_v2  ;;  %340 = vmatpush3.bf16.msra.mxu1 %v369_v6  ;;  %v375_v17 = vld [vmem:[%s484_s3] sm:$0xff]  }
   0x8   :  { %321 = vmatprep.subr.bf16.mxu0 %v388_v0  ;;  %341 = vmatprep.subr.bf16.mxu1 %v388_v0  ;;  %v280_v18 = vld [vmem:[%s486_s2] ss:$0 sm:$0xff] }
   0x9   :  { %v290_v28 = vld [vmem:[%s487_s4] ss:$0 sm:$0xff] }
   0xb   :  { %322 = vmatpush3.bf16.msra.mxu0 %v361_v3  ;;  %342 = vmatpush3.bf16.msra.mxu1 %v370_v12 }
   0xc   :  { %323 = vmatprep.subr.bf16.mxu0 %v388_v0  ;;  %343 = vmatprep.subr.bf16.mxu1 %v388_v0 }
   0xf   :  { %324 = vmatpush3.bf16.msra.mxu0 %v362_v5  ;;  %344 = vmatpush3.bf16.msra.mxu1 %v371_v13 }
  0x10   :  { %325 = vmatprep.subr.bf16.mxu0 %v388_v0  ;;  %345 = vmatprep.subr.bf16.mxu1 %v388_v0 }
  0x13   :  { %326 = vmatpush3.bf16.msra.mxu0 %v363_v7  ;;  %346 = vmatpush3.bf16.msra.mxu1 %v372_v14 }
  0x14   :  { %327 = vmatprep.subr.bf16.mxu0 %v388_v0  ;;  %347 = vmatprep.subr.bf16.mxu1 %v388_v0 }
  0x17   :  { %328 = vmatpush3.bf16.msra.mxu0 %v364_v8  ;;  %348 = vmatpush3.bf16.msra.mxu1 %v373_v15 }
  0x18   :  { %329 = vmatprep.subr.bf16.mxu0 %v388_v0  ;;  %349 = vmatprep.subr.bf16.mxu1 %v388_v0 }
  0x1b   :  { %330 = vmatpush3.bf16.msra.mxu0 %v365_v9  ;;  %350 = vmatpush3.bf16.msra.mxu1 %v374_v16 }
  0x1c   :  { %331 = vmatprep.subr.bf16.mxu0 %v388_v0  ;;  %351 = vmatprep.subr.bf16.mxu1 %v388_v0 }
  0x1f   :  { %332 = vmatpush3.bf16.msra.mxu0 %v366_v10  ;;  %352 = vmatpush3.bf16.msra.mxu1 %v375_v17 }
  0x22   :  { %334 = vmatmul.mubr.bf16.vlgmr.msra.gmra.mxu0 %v367_v11 }
  0xe2   :  { %v134_v19 = vpop.f32.mrf.mxu0 }
  0xe3   :  { %v135_v20 = vadd.f32 %v280_v18, %v134_v19 }
  0xe4   :  { %v335_v21 = vpop.f32.mrf.mxu0 }
  0xe5   :  { %376 = vtanh.f32 %v135_v20 }
  0xe6   :  { %v137_v22 = vpop.f32.mrf.mxu0 }
  0xe7   :  { %v138_v23 = vadd.f32 %v280_v18, %v137_v22 }
  0xe8   :  { %v336_v24 = vpop.f32.mrf.mxu0 }
  0xe9   :  { %378 = vtanh.f32 %v138_v23 }
  0xf2   :  { %v377_v25 = vpop.eup %376 }
  0xf6   :  { %v379_v26 = vpop.eup %378 }
  0xf7   :  { %v143_v27 = vpack.c.bf16 %v379_v26, %v377_v25 }
  0xf9   :  { %354 = vmatmul.mubr.bf16.vlgmr.msra.gmra.mxu1 %v143_v27 }
 0x1b9   :  { %v249_v29 = vpop.f32.mrf.mxu1 }
 0x1ba   :  { %v250_v30 = vadd.f32 %v290_v28, %v249_v29 }
 0x1bb   :  { %v355_v31 = vpop.f32.mrf.mxu1 }
 0x1bc   :  { %256 = vmax.xlane.f32.xlu0 %v250_v30 }
 0x1bd   :  { %v252_v32 = vpop.f32.mrf.mxu1 }
 0x1be   :  { %v253_v33 = vadd.f32 %v290_v28, %v252_v32 }
 0x1bf   :  { %v356_v34 = vpop.f32.mrf.mxu1 }
 0x1c0   :  { %258 = vmax.xlane.f32.xlu0 %v253_v33 }
 0x245   :  { %v257_v35 = vpop.xlane.xlu0 %256 }
 0x246   :  { %v260_v36 = vsub.f32 %v250_v30, %v257_v35 }
 0x248   :  { %v262_v37 = vmul.f32 1.442695, %v260_v36 }
 0x249   :  { %v259_v38 = vpop.xlane.xlu0 %258 }
 0x24a   :  { %380 = vpow2.f32 %v262_v37  ;;  %v261_v39 = vsub.f32 %v253_v33, %v259_v38 }
 0x24c   :  { %v264_v40 = vmul.f32 1.442695, %v261_v39 }
 0x24e   :  { %382 = vpow2.f32 %v264_v40 }
 0x257   :  { %v381_v41 = vpop.eup %380 }
 0x258   :  { %266 = vadd.xlane.f32.xlu1 %v381_v41 }
 0x25b   :  { %v383_v42 = vpop.eup %382 }
 0x25c   :  { %268 = vadd.xlane.f32.xlu1 %v383_v42 }
 0x2e1   :  { %v267_v43 = vpop.xlane.xlu1 %266 }
 0x2e2   :  { %384 = vrcp.f32 %v267_v43 }
 0x2e5   :  { %v269_v44 = vpop.xlane.xlu1 %268 }
 0x2e6   :  { %386 = vrcp.f32 %v269_v44 }
 0x2ef   :  { %v385_v45 = vpop.eup %384 }
 0x2f0   :  { %v272_v46 = vmul.f32 %v385_v45, %v381_v41 }
 0x2f2   :  { %274 = vst [vmem:[%s488_s5] sm:$0xff] %v272_v46 }
 0x2f3   :  { %v387_v47 = vpop.eup %386 }
 0x2f4   :  { %v273_v48 = vmul.f32 %v387_v47, %v383_v42 }
 0x2f6   :  { %275 = vst [vmem:[%s488_s5 + $0x8] sm:$0xff] %v273_v48 }

</bundles_post_ra>
